<compile_context>
chip_gen: v6e
topology: v6e:2x2x1
jax: 0.10.0
libtpu: 0.0.40
codegen_flags: <defaults>
</compile_context>

<pallas_src>
import numpy as np
import jax
import jax.numpy as jnp
from jax import lax
from jax.experimental import pallas as pl
from jax.experimental.pallas import tpu as pltpu

# ----- synthetic "env" constants (the PyTorch module reads these from `env`) -
C, H, W = 3, 8, 8                                   # observation_space.shape
DIRS = [(-1, -1), (-1, 0), (-1, 1), (0, -1), (0, 1), (1, -1), (1, 0), (1, 1)]
N_ACTIONS = len(DIRS)                               # 8
HW = H * W                                          # n_state_dims = 64
D_IN = C * H * W                                    # 192
HID1, HID2, HID_POL = 32, 64, 32
K = 5

PACK_W = 192        # lane width of the packed bf16 parameter buffer
ROW_ALIGN = 16      # bf16 sublane-tile alignment for every packed block
PAD_W = 128         # board slab width: lanes [0:64) board, [64:128) zero pad
OUT_W = 128         # lane-dense packed output: [ v(64) | prob(8) | state_value... ]

# All 8 neighbour offsets (dr, dc); same set as {(j_dot, i_dot) for DIRS}.
NEIGHBOR_OFFSETS = [(dr, dc) for dr in (-1, 0, 1) for dc in (-1, 0, 1)
                    if not (dr == 0 and dc == 0)]


# ------------------------- parameter packing -----------------------------------
def _pack_params(named):
    """Pack named (rows, cols) blocks into one bf16 (R, PACK_W) buffer.

    Every block is placed at a 16-row-aligned offset (bf16 sublane tile) and
    keeps its true column width in `offsets`, so in-kernel slices are aligned
    loads of only the lanes that are actually used.
    """
    offsets = {}
    blocks = []
    r = 0
    for name, arr in named:
        a = np.asarray(arr, np.float32)
        if a.ndim == 1:
            a = a[None, :]
        nr, nc = a.shape
        nr_pad = -(-nr // ROW_ALIGN) * ROW_ALIGN
        blk = np.zeros((nr_pad, PACK_W), np.float32)
        blk[:nr, :nc] = a
        offsets[name] = (r, nr, nc)
        blocks.append(blk)
        r += nr_pad
    buf = np.concatenate(blocks, axis=0)
    return jnp.asarray(buf, dtype=jnp.bfloat16), offsets


# ------------------------------- kernel ----------------------------------------
def make_vpn_kernel(offsets):
    def kernel(x_ref, params_ref, out_ref):
        f32 = jnp.float32
        bf16 = jnp.bfloat16

        def g(name):                         # static, 16-row-aligned bf16 slice
            r0, nr, nc = offsets[name]
            return params_ref[r0:r0 + nr, 0:nc]

        def dot(a, b):                       # bf16 MXU inputs, f32 accumulate
            return jnp.dot(a.astype(bf16), b, preferred_element_type=f32)

        def sigmoid(z):                      # EUP exp + approx reciprocal
            return pl.reciprocal(1.0 + jnp.exp(-z), approx=True)

        state = x_ref[...]                                    # (B, 192) f32
        B = state.shape[0]

        # ---- trunk: ONE fused matmul for both consumers of `state` ----------
        # columns [0:32)  = affine1 weights, columns [32:64) = state half of
        # policyNetwork1 (cat(v, state) ordering).
        sw = dot(state, g("wstate"))                          # (B, 64) f32
        h = jnp.maximum(sw[:, 0:HID1] + g("b1"), 0.0)         # (B, 32)
        pol_state = sw[:, HID1:HID1 + HID_POL]                # (B, 32), bias later

        h = jnp.maximum(dot(h, g("w2")) + g("b2"), 0.0)       # (B, 64)

        # fused sigmoid heads: [r_out | r_in | p]  (one matmul, one sigmoid)
        heads = sigmoid(dot(h, g("whead")) + g("bhead"))      # (B, 192) f32
        r_out = heads[:, 0:HW]
        r_in = heads[:, HW:2 * HW]
        p = heads[:, 2 * HW:3 * HW]

        # Embed the 64-cell board into a 128-lane slab.  Lanes [64:128) stay 0
        # and act as the F.pad zero border for out-of-bounds neighbours.
        zpad = jnp.zeros((B, PAD_W - HW), f32)
        p_pad = jnp.concatenate([p, zpad], axis=-1)           # (B, 128)
        rio_pad = jnp.concatenate([r_in - r_out, zpad], axis=-1)

        # Loop-invariant per-direction validity masks (built once, on iota).
        lane = lax.broadcasted_iota(jnp.int32, (B, PAD_W), 1)
        col = jnp.bitwise_and(lane, W - 1)                    # W is a power of 2
        in_board = lane < HW
        masks = []
        for dr, dc in NEIGHBOR_OFFSETS:
            ok = in_board
            if dr == -1:
                ok = jnp.logical_and(ok, lane >= W)
            if dr == 1:
                ok = jnp.logical_and(ok, lane < HW - W)
            if dc == -1:
                ok = jnp.logical_and(ok, col >= 1)
            if dc == 1:
                ok = jnp.logical_and(ok, col <= W - 2)
            masks.append(ok)

        # ---- K-step value iteration, entirely on the VPU/XLU -----------------
        # shifted_d(i,j) = q(i+dr, j+dc) (0 if out of bounds); implemented as a
        # static lane rotate of the zero-padded slab + boundary mask.
        v = jnp.zeros((B, PAD_W), f32)
        for _ in range(K):                                    # unrolled (K=5)
            q = v * p_pad + rio_pad                           # (B, 128)
            vnew = None
            for (dr, dc), ok in zip(NEIGHBOR_OFFSETS, masks):
                off = dr * W + dc                             # flat shift, != 0
                s = pltpu.roll(q, shift=(-off) % PAD_W, axis=1)
                s = jnp.where(ok, s, 0.0)
                vnew = s if vnew is None else jnp.maximum(vnew, s)
            v = vnew

        v_board = v[:, 0:HW]                                  # (B, 64)

        # ---- policy head ------------------------------------------------------
        pol = jnp.maximum(dot(v_board, g("wpv")) + pol_state + g("bp1"), 0.0)
        logits = dot(pol, g("wh")) + g("bh")                  # (B, 8)

        m = jnp.max(logits, axis=-1, keepdims=True)
        e = jnp.exp(logits - m)
        prob = e * pl.reciprocal(jnp.sum(e, axis=-1, keepdims=True), approx=True)

        # state_value = v at the agent cell (channel 1 of the observation).
        # TODO(synk): the torch code does v[current_position] with a (1,2) index
        # (row advanced-indexing -> shape (1,2,W), almost certainly a bug); we
        # return the intended scalar v[i_agent, j_agent], computed in-kernel via
        # an exact-one-hot masked sum.
        agent = state[:, HW:2 * HW]                           # flattened x[1]
        sv = jnp.sum(jnp.where(agent == 1.0, v_board, 0.0),
                     axis=-1, keepdims=True)

        # single lane-dense (B, 128) store: [ v | prob | state_value (bcast) ]
        out_ref[...] = jnp.concatenate(
            [v_board, prob, jnp.broadcast_to(sv, (B, OUT_W - HW - N_ACTIONS))],
            axis=-1)

    return kernel


# ------------------------------- params / wrapper -------------------------------
def init_raw_params(key):
    def linear(k, fan_in, fan_out):
        k1, k2 = jax.random.split(k)
        bound = 1.0 / np.sqrt(fan_in)
        w = jax.random.uniform(k1, (fan_in, fan_out), jnp.float32, -bound, bound)
        b = jax.random.uniform(k2, (1, fan_out), jnp.float32, -bound, bound)
        return w, b

    keys = jax.random.split(key, 7)
    w1, b1 = linear(keys[0], D_IN, HID1)
    w2, b2 = linear(keys[1], HID1, HID2)
    wro, bro = linear(keys[2], HID2, HW)
    wri, bri = linear(keys[3], HID2, HW)
    wp, bp = linear(keys[4], HID2, HW)
    wpol, bpol = linear(keys[5], 4 * HW, HID_POL)
    wh, bh = linear(keys[6], HID_POL, N_ACTIONS)
    # cat(v, state) order -> rows [0:HW) of wpol act on v, rows [HW:4*HW) on state.
    wpv, wps = wpol[:HW], wpol[HW:]
    return [
        # weight blocks first (row counts are all multiples of 16)
        ("wstate", jnp.concatenate([w1, wps], axis=1)),       # (192, 64) fused
        ("whead", jnp.concatenate([wro, wri, wp], axis=1)),   # (64, 192)
        ("w2", w2),                                           # (32, 64)
        ("wpv", wpv),                                         # (64, 32)
        ("wh", wh),                                           # (32, 8)
        # bias rows
        ("b1", b1), ("b2", b2),
        ("bhead", jnp.concatenate([bro, bri, bp], axis=1)),
        ("bp1", bpol), ("bh", bh),
    ]


def build_vpn(key):
    """Returns a jitted forward(x) -> (action_prob, state_value, v)."""
    packed, offsets = _pack_params(init_raw_params(key))
    kernel = make_vpn_kernel(offsets)
    vmem = pl.BlockSpec(memory_space=pltpu.MemorySpace.VMEM)

    @jax.jit
    def forward(x):
        single = (x.ndim == 3)                      # module semantics: (3, H, W)
        x_flat = jnp.reshape(x, (-1, D_IN)).astype(jnp.float32)
        B = x_flat.shape[0]
        out = pl.pallas_call(
            kernel,
            out_shape=jax.ShapeDtypeStruct((B, OUT_W), jnp.float32),
            in_specs=[vmem, vmem],
            out_specs=vmem,
        )(x_flat, packed)
        v = jnp.reshape(out[:, 0:HW], (B, H, W))
        action_prob = out[:, HW:HW + N_ACTIONS]
        state_value = out[:, HW + N_ACTIONS]
        if single:
            return action_prob[0], state_value[0], v[0]
        return action_prob, state_value, v

    return forward


if __name__ == "__main__":
    key = jax.random.PRNGKey(0)
    pkey, xkey = jax.random.split(key, 2)
    forward = build_vpn(pkey)

    # Deterministic (3, H, W) observation: channel 0 = walls,
    # channel 1 = agent one-hot (drives state_value), channel 2 = goal one-hot.
    walls = (jax.random.uniform(xkey, (H, W)) < 0.2).astype(jnp.float32)
    agent = jnp.zeros((H, W), jnp.float32).at[3, 4].set(1.0)
    goal = jnp.zeros((H, W), jnp.float32).at[6, 1].set(1.0)
    x = jnp.stack([walls, agent, goal], axis=0)     # (3, 8, 8)

    action_prob, state_value, v = forward(x)
    jax.block_until_ready((action_prob, state_value, v))
    print("KERNEL_OK")
</pallas_src>

<mosaic_0001>
module attributes {stable_mosaic.version = 11 : i64} {
  func.func @kernel(%arg0: memref<1x192xf32, #tpu.memory_space<vmem>>, %arg1: memref<464x192xbf16, #tpu.memory_space<vmem>>, %arg2: memref<1x128xf32, #tpu.memory_space<vmem>>) attributes {dimension_semantics = [], scalar_prefetch = 0 : i64, scratch_operands = 0 : i64, tpu.core_type = #tpu.core_type<tc>} {
    %c0 = arith.constant 0 : index
    %c0_0 = arith.constant 0 : index
    %0 = vector.load %arg0[%c0, %c0_0] : memref<1x192xf32, #tpu.memory_space<vmem>>, vector<1x192xf32>
    %c0_1 = arith.constant 0 : index
    %c0_2 = arith.constant 0 : index
    %1 = vector.load %arg1[%c0_1, %c0_2] : memref<464x192xbf16, #tpu.memory_space<vmem>>, vector<192x64xbf16>
    %2 = arith.truncf %0 : vector<1x192xf32> to vector<1x192xbf16>
    %cst = arith.constant dense<0.000000e+00> : vector<1x64xf32>
    %3 = tpu.matmul %2, %1, %cst {dimension_numbers = #tpu.dot_dimension_numbers<[1], [0], [0], [1], [0, 0, 1, 1], [], []>} : vector<1x192xbf16>, vector<192x64xbf16>, vector<1x64xf32> -> vector<1x64xf32>
    %4 = vector.extract_strided_slice %3 {offsets = [0, 0], sizes = [1, 32], strides = [1, 1]} : vector<1x64xf32> to vector<1x32xf32>
    %c384 = arith.constant 384 : index
    %c0_3 = arith.constant 0 : index
    %5 = vector.load %arg1[%c384, %c0_3] : memref<464x192xbf16, #tpu.memory_space<vmem>>, vector<1x32xbf16>
    %6 = arith.extf %5 : vector<1x32xbf16> to vector<1x32xf32>
    %7 = arith.addf %4, %6 : vector<1x32xf32>
    %cst_4 = arith.constant 0.000000e+00 : f32
    %8 = vector.broadcast %cst_4 : f32 to vector<1x32xf32>
    %9 = arith.maximumf %7, %8 : vector<1x32xf32>
    %10 = vector.extract_strided_slice %3 {offsets = [0, 32], sizes = [1, 32], strides = [1, 1]} : vector<1x64xf32> to vector<1x32xf32>
    %c256 = arith.constant 256 : index
    %c0_5 = arith.constant 0 : index
    %11 = vector.load %arg1[%c256, %c0_5] : memref<464x192xbf16, #tpu.memory_space<vmem>>, vector<32x64xbf16>
    %12 = arith.truncf %9 : vector<1x32xf32> to vector<1x32xbf16>
    %cst_6 = arith.constant dense<0.000000e+00> : vector<1x64xf32>
    %13 = tpu.matmul %12, %11, %cst_6 {dimension_numbers = #tpu.dot_dimension_numbers<[1], [0], [0], [1], [0, 0, 1, 1], [], []>} : vector<1x32xbf16>, vector<32x64xbf16>, vector<1x64xf32> -> vector<1x64xf32>
    %c400 = arith.constant 400 : index
    %c0_7 = arith.constant 0 : index
    %14 = vector.load %arg1[%c400, %c0_7] : memref<464x192xbf16, #tpu.memory_space<vmem>>, vector<1x64xbf16>
    %15 = arith.extf %14 : vector<1x64xbf16> to vector<1x64xf32>
    %16 = arith.addf %13, %15 : vector<1x64xf32>
    %cst_8 = arith.constant 0.000000e+00 : f32
    %17 = vector.broadcast %cst_8 : f32 to vector<1x64xf32>
    %18 = arith.maximumf %16, %17 : vector<1x64xf32>
    %c192 = arith.constant 192 : index
    %c0_9 = arith.constant 0 : index
    %19 = vector.load %arg1[%c192, %c0_9] : memref<464x192xbf16, #tpu.memory_space<vmem>>, vector<64x192xbf16>
    %20 = arith.truncf %18 : vector<1x64xf32> to vector<1x64xbf16>
    %cst_10 = arith.constant dense<0.000000e+00> : vector<1x192xf32>
    %21 = tpu.matmul %20, %19, %cst_10 {dimension_numbers = #tpu.dot_dimension_numbers<[1], [0], [0], [1], [0, 0, 1, 1], [], []>} : vector<1x64xbf16>, vector<64x192xbf16>, vector<1x192xf32> -> vector<1x192xf32>
    %c416 = arith.constant 416 : index
    %c0_11 = arith.constant 0 : index
    %22 = vector.load %arg1[%c416, %c0_11] : memref<464x192xbf16, #tpu.memory_space<vmem>>, vector<1x192xbf16>
    %23 = arith.extf %22 : vector<1x192xbf16> to vector<1x192xf32>
    %24 = arith.addf %21, %23 : vector<1x192xf32>
    %cst_12 = arith.constant 0.000000e+00 : f32
    %25 = vector.broadcast %cst_12 : f32 to vector<1x192xf32>
    %26 = arith.subf %25, %24 : vector<1x192xf32>
    %27 = math.exp %26 : vector<1x192xf32>
    %cst_13 = arith.constant 1.000000e+00 : f32
    %28 = vector.broadcast %cst_13 : f32 to vector<1x192xf32>
    %29 = arith.addf %28, %27 : vector<1x192xf32>
    %30 = tpu.reciprocal %29 {approx = true} : vector<1x192xf32> -> vector<1x192xf32>
    %31 = vector.extract_strided_slice %30 {offsets = [0, 0], sizes = [1, 64], strides = [1, 1]} : vector<1x192xf32> to vector<1x64xf32>
    %32 = vector.extract_strided_slice %30 {offsets = [0, 64], sizes = [1, 64], strides = [1, 1]} : vector<1x192xf32> to vector<1x64xf32>
    %33 = vector.extract_strided_slice %30 {offsets = [0, 128], sizes = [1, 64], strides = [1, 1]} : vector<1x192xf32> to vector<1x64xf32>
    %cst_14 = arith.constant 0.000000e+00 : f32
    %34 = vector.broadcast %cst_14 : f32 to vector<1x64xf32>
    %35 = tpu.concatenate %33, %34 in 1 : vector<1x64xf32>, vector<1x64xf32> -> vector<1x128xf32>
    %36 = arith.subf %32, %31 : vector<1x64xf32>
    %37 = tpu.concatenate %36, %34 in 1 : vector<1x64xf32>, vector<1x64xf32> -> vector<1x128xf32>
    %38 = tpu.iota {dimensions = array<i32: 1>} : vector<1x128xi32>
    %c7_i32 = arith.constant 7 : i32
    %39 = vector.broadcast %c7_i32 : i32 to vector<1x128xi32>
    %40 = arith.andi %38, %39 : vector<1x128xi32>
    %c64_i32 = arith.constant 64 : i32
    %41 = vector.broadcast %c64_i32 : i32 to vector<1x128xi32>
    %42 = arith.cmpi slt, %38, %41 : vector<1x128xi32>
    %c8_i32 = arith.constant 8 : i32
    %43 = vector.broadcast %c8_i32 : i32 to vector<1x128xi32>
    %44 = arith.cmpi sge, %38, %43 : vector<1x128xi32>
    %45 = arith.andi %42, %44 : vector<1x128xi1>
    %c1_i32 = arith.constant 1 : i32
    %46 = vector.broadcast %c1_i32 : i32 to vector<1x128xi32>
    %47 = arith.cmpi sge, %40, %46 : vector<1x128xi32>
    %48 = arith.andi %45, %47 : vector<1x128xi1>
    %c8_i32_15 = arith.constant 8 : i32
    %49 = vector.broadcast %c8_i32_15 : i32 to vector<1x128xi32>
    %50 = arith.cmpi sge, %38, %49 : vector<1x128xi32>
    %51 = arith.andi %42, %50 : vector<1x128xi1>
    %c8_i32_16 = arith.constant 8 : i32
    %52 = vector.broadcast %c8_i32_16 : i32 to vector<1x128xi32>
    %53 = arith.cmpi sge, %38, %52 : vector<1x128xi32>
    %54 = arith.andi %42, %53 : vector<1x128xi1>
    %c6_i32 = arith.constant 6 : i32
    %55 = vector.broadcast %c6_i32 : i32 to vector<1x128xi32>
    %56 = arith.cmpi sle, %40, %55 : vector<1x128xi32>
    %57 = arith.andi %54, %56 : vector<1x128xi1>
    %c1_i32_17 = arith.constant 1 : i32
    %58 = vector.broadcast %c1_i32_17 : i32 to vector<1x128xi32>
    %59 = arith.cmpi sge, %40, %58 : vector<1x128xi32>
    %60 = arith.andi %42, %59 : vector<1x128xi1>
    %c6_i32_18 = arith.constant 6 : i32
    %61 = vector.broadcast %c6_i32_18 : i32 to vector<1x128xi32>
    %62 = arith.cmpi sle, %40, %61 : vector<1x128xi32>
    %63 = arith.andi %42, %62 : vector<1x128xi1>
    %c56_i32 = arith.constant 56 : i32
    %64 = vector.broadcast %c56_i32 : i32 to vector<1x128xi32>
    %65 = arith.cmpi slt, %38, %64 : vector<1x128xi32>
    %66 = arith.andi %42, %65 : vector<1x128xi1>
    %c1_i32_19 = arith.constant 1 : i32
    %67 = vector.broadcast %c1_i32_19 : i32 to vector<1x128xi32>
    %68 = arith.cmpi sge, %40, %67 : vector<1x128xi32>
    %69 = arith.andi %66, %68 : vector<1x128xi1>
    %c56_i32_20 = arith.constant 56 : i32
    %70 = vector.broadcast %c56_i32_20 : i32 to vector<1x128xi32>
    %71 = arith.cmpi slt, %38, %70 : vector<1x128xi32>
    %72 = arith.andi %42, %71 : vector<1x128xi1>
    %c56_i32_21 = arith.constant 56 : i32
    %73 = vector.broadcast %c56_i32_21 : i32 to vector<1x128xi32>
    %74 = arith.cmpi slt, %38, %73 : vector<1x128xi32>
    %75 = arith.andi %42, %74 : vector<1x128xi1>
    %c6_i32_22 = arith.constant 6 : i32
    %76 = vector.broadcast %c6_i32_22 : i32 to vector<1x128xi32>
    %77 = arith.cmpi sle, %40, %76 : vector<1x128xi32>
    %78 = arith.andi %75, %77 : vector<1x128xi1>
    %cst_23 = arith.constant 0.000000e+00 : f32
    %79 = vector.broadcast %cst_23 : f32 to vector<1x128xf32>
    %80 = arith.mulf %79, %35 : vector<1x128xf32>
    %81 = arith.addf %80, %37 : vector<1x128xf32>
    %c9_i32 = arith.constant 9 : i32
    %82 = tpu.dynamic_rotate %81 by %c9_i32 dim 1 : vector<1x128xf32>, i32 -> vector<1x128xf32>
    %cst_24 = arith.constant 0.000000e+00 : f32
    %83 = vector.broadcast %cst_24 : f32 to vector<1x128xf32>
    %84 = arith.select %48, %82, %83 : vector<1x128xi1>, vector<1x128xf32>
    %c8_i32_25 = arith.constant 8 : i32
    %85 = tpu.dynamic_rotate %81 by %c8_i32_25 dim 1 : vector<1x128xf32>, i32 -> vector<1x128xf32>
    %cst_26 = arith.constant 0.000000e+00 : f32
    %86 = vector.broadcast %cst_26 : f32 to vector<1x128xf32>
    %87 = arith.select %51, %85, %86 : vector<1x128xi1>, vector<1x128xf32>
    %88 = arith.maximumf %84, %87 : vector<1x128xf32>
    %c7_i32_27 = arith.constant 7 : i32
    %89 = tpu.dynamic_rotate %81 by %c7_i32_27 dim 1 : vector<1x128xf32>, i32 -> vector<1x128xf32>
    %cst_28 = arith.constant 0.000000e+00 : f32
    %90 = vector.broadcast %cst_28 : f32 to vector<1x128xf32>
    %91 = arith.select %57, %89, %90 : vector<1x128xi1>, vector<1x128xf32>
    %92 = arith.maximumf %88, %91 : vector<1x128xf32>
    %c1_i32_29 = arith.constant 1 : i32
    %93 = tpu.dynamic_rotate %81 by %c1_i32_29 dim 1 : vector<1x128xf32>, i32 -> vector<1x128xf32>
    %cst_30 = arith.constant 0.000000e+00 : f32
    %94 = vector.broadcast %cst_30 : f32 to vector<1x128xf32>
    %95 = arith.select %60, %93, %94 : vector<1x128xi1>, vector<1x128xf32>
    %96 = arith.maximumf %92, %95 : vector<1x128xf32>
    %c127_i32 = arith.constant 127 : i32
    %97 = tpu.dynamic_rotate %81 by %c127_i32 dim 1 : vector<1x128xf32>, i32 -> vector<1x128xf32>
    %cst_31 = arith.constant 0.000000e+00 : f32
    %98 = vector.broadcast %cst_31 : f32 to vector<1x128xf32>
    %99 = arith.select %63, %97, %98 : vector<1x128xi1>, vector<1x128xf32>
    %100 = arith.maximumf %96, %99 : vector<1x128xf32>
    %c121_i32 = arith.constant 121 : i32
    %101 = tpu.dynamic_rotate %81 by %c121_i32 dim 1 : vector<1x128xf32>, i32 -> vector<1x128xf32>
    %cst_32 = arith.constant 0.000000e+00 : f32
    %102 = vector.broadcast %cst_32 : f32 to vector<1x128xf32>
    %103 = arith.select %69, %101, %102 : vector<1x128xi1>, vector<1x128xf32>
    %104 = arith.maximumf %100, %103 : vector<1x128xf32>
    %c120_i32 = arith.constant 120 : i32
    %105 = tpu.dynamic_rotate %81 by %c120_i32 dim 1 : vector<1x128xf32>, i32 -> vector<1x128xf32>
    %cst_33 = arith.constant 0.000000e+00 : f32
    %106 = vector.broadcast %cst_33 : f32 to vector<1x128xf32>
    %107 = arith.select %72, %105, %106 : vector<1x128xi1>, vector<1x128xf32>
    %108 = arith.maximumf %104, %107 : vector<1x128xf32>
    %c119_i32 = arith.constant 119 : i32
    %109 = tpu.dynamic_rotate %81 by %c119_i32 dim 1 : vector<1x128xf32>, i32 -> vector<1x128xf32>
    %cst_34 = arith.constant 0.000000e+00 : f32
    %110 = vector.broadcast %cst_34 : f32 to vector<1x128xf32>
    %111 = arith.select %78, %109, %110 : vector<1x128xi1>, vector<1x128xf32>
    %112 = arith.maximumf %108, %111 : vector<1x128xf32>
    %113 = arith.mulf %112, %35 : vector<1x128xf32>
    %114 = arith.addf %113, %37 : vector<1x128xf32>
    %c9_i32_35 = arith.constant 9 : i32
    %115 = tpu.dynamic_rotate %114 by %c9_i32_35 dim 1 : vector<1x128xf32>, i32 -> vector<1x128xf32>
    %cst_36 = arith.constant 0.000000e+00 : f32
    %116 = vector.broadcast %cst_36 : f32 to vector<1x128xf32>
    %117 = arith.select %48, %115, %116 : vector<1x128xi1>, vector<1x128xf32>
    %c8_i32_37 = arith.constant 8 : i32
    %118 = tpu.dynamic_rotate %114 by %c8_i32_37 dim 1 : vector<1x128xf32>, i32 -> vector<1x128xf32>
    %cst_38 = arith.constant 0.000000e+00 : f32
    %119 = vector.broadcast %cst_38 : f32 to vector<1x128xf32>
    %120 = arith.select %51, %118, %119 : vector<1x128xi1>, vector<1x128xf32>
    %121 = arith.maximumf %117, %120 : vector<1x128xf32>
    %c7_i32_39 = arith.constant 7 : i32
    %122 = tpu.dynamic_rotate %114 by %c7_i32_39 dim 1 : vector<1x128xf32>, i32 -> vector<1x128xf32>
    %cst_40 = arith.constant 0.000000e+00 : f32
    %123 = vector.broadcast %cst_40 : f32 to vector<1x128xf32>
    %124 = arith.select %57, %122, %123 : vector<1x128xi1>, vector<1x128xf32>
    %125 = arith.maximumf %121, %124 : vector<1x128xf32>
    %c1_i32_41 = arith.constant 1 : i32
    %126 = tpu.dynamic_rotate %114 by %c1_i32_41 dim 1 : vector<1x128xf32>, i32 -> vector<1x128xf32>
    %cst_42 = arith.constant 0.000000e+00 : f32
    %127 = vector.broadcast %cst_42 : f32 to vector<1x128xf32>
    %128 = arith.select %60, %126, %127 : vector<1x128xi1>, vector<1x128xf32>
    %129 = arith.maximumf %125, %128 : vector<1x128xf32>
    %c127_i32_43 = arith.constant 127 : i32
    %130 = tpu.dynamic_rotate %114 by %c127_i32_43 dim 1 : vector<1x128xf32>, i32 -> vector<1x128xf32>
    %cst_44 = arith.constant 0.000000e+00 : f32
    %131 = vector.broadcast %cst_44 : f32 to vector<1x128xf32>
    %132 = arith.select %63, %130, %131 : vector<1x128xi1>, vector<1x128xf32>
    %133 = arith.maximumf %129, %132 : vector<1x128xf32>
    %c121_i32_45 = arith.constant 121 : i32
    %134 = tpu.dynamic_rotate %114 by %c121_i32_45 dim 1 : vector<1x128xf32>, i32 -> vector<1x128xf32>
    %cst_46 = arith.constant 0.000000e+00 : f32
    %135 = vector.broadcast %cst_46 : f32 to vector<1x128xf32>
    %136 = arith.select %69, %134, %135 : vector<1x128xi1>, vector<1x128xf32>
    %137 = arith.maximumf %133, %136 : vector<1x128xf32>
    %c120_i32_47 = arith.constant 120 : i32
    %138 = tpu.dynamic_rotate %114 by %c120_i32_47 dim 1 : vector<1x128xf32>, i32 -> vector<1x128xf32>
    %cst_48 = arith.constant 0.000000e+00 : f32
    %139 = vector.broadcast %cst_48 : f32 to vector<1x128xf32>
    %140 = arith.select %72, %138, %139 : vector<1x128xi1>, vector<1x128xf32>
    %141 = arith.maximumf %137, %140 : vector<1x128xf32>
    %c119_i32_49 = arith.constant 119 : i32
    %142 = tpu.dynamic_rotate %114 by %c119_i32_49 dim 1 : vector<1x128xf32>, i32 -> vector<1x128xf32>
    %cst_50 = arith.constant 0.000000e+00 : f32
    %143 = vector.broadcast %cst_50 : f32 to vector<1x128xf32>
    %144 = arith.select %78, %142, %143 : vector<1x128xi1>, vector<1x128xf32>
    %145 = arith.maximumf %141, %144 : vector<1x128xf32>
    %146 = arith.mulf %145, %35 : vector<1x128xf32>
    %147 = arith.addf %146, %37 : vector<1x128xf32>
    %c9_i32_51 = arith.constant 9 : i32
    %148 = tpu.dynamic_rotate %147 by %c9_i32_51 dim 1 : vector<1x128xf32>, i32 -> vector<1x128xf32>
    %cst_52 = arith.constant 0.000000e+00 : f32
    %149 = vector.broadcast %cst_52 : f32 to vector<1x128xf32>
    %150 = arith.select %48, %148, %149 : vector<1x128xi1>, vector<1x128xf32>
    %c8_i32_53 = arith.constant 8 : i32
    %151 = tpu.dynamic_rotate %147 by %c8_i32_53 dim 1 : vector<1x128xf32>, i32 -> vector<1x128xf32>
    %cst_54 = arith.constant 0.000000e+00 : f32
    %152 = vector.broadcast %cst_54 : f32 to vector<1x128xf32>
    %153 = arith.select %51, %151, %152 : vector<1x128xi1>, vector<1x128xf32>
    %154 = arith.maximumf %150, %153 : vector<1x128xf32>
    %c7_i32_55 = arith.constant 7 : i32
    %155 = tpu.dynamic_rotate %147 by %c7_i32_55 dim 1 : vector<1x128xf32>, i32 -> vector<1x128xf32>
    %cst_56 = arith.constant 0.000000e+00 : f32
    %156 = vector.broadcast %cst_56 : f32 to vector<1x128xf32>
    %157 = arith.select %57, %155, %156 : vector<1x128xi1>, vector<1x128xf32>
    %158 = arith.maximumf %154, %157 : vector<1x128xf32>
    %c1_i32_57 = arith.constant 1 : i32
    %159 = tpu.dynamic_rotate %147 by %c1_i32_57 dim 1 : vector<1x128xf32>, i32 -> vector<1x128xf32>
    %cst_58 = arith.constant 0.000000e+00 : f32
    %160 = vector.broadcast %cst_58 : f32 to vector<1x128xf32>
    %161 = arith.select %60, %159, %160 : vector<1x128xi1>, vector<1x128xf32>
    %162 = arith.maximumf %158, %161 : vector<1x128xf32>
    %c127_i32_59 = arith.constant 127 : i32
    %163 = tpu.dynamic_rotate %147 by %c127_i32_59 dim 1 : vector<1x128xf32>, i32 -> vector<1x128xf32>
    %cst_60 = arith.constant 0.000000e+00 : f32
    %164 = vector.broadcast %cst_60 : f32 to vector<1x128xf32>
    %165 = arith.select %63, %163, %164 : vector<1x128xi1>, vector<1x128xf32>
    %166 = arith.maximumf %162, %165 : vector<1x128xf32>
    %c121_i32_61 = arith.constant 121 : i32
    %167 = tpu.dynamic_rotate %147 by %c121_i32_61 dim 1 : vector<1x128xf32>, i32 -> vector<1x128xf32>
    %cst_62 = arith.constant 0.000000e+00 : f32
    %168 = vector.broadcast %cst_62 : f32 to vector<1x128xf32>
    %169 = arith.select %69, %167, %168 : vector<1x128xi1>, vector<1x128xf32>
    %170 = arith.maximumf %166, %169 : vector<1x128xf32>
    %c120_i32_63 = arith.constant 120 : i32
    %171 = tpu.dynamic_rotate %147 by %c120_i32_63 dim 1 : vector<1x128xf32>, i32 -> vector<1x128xf32>
    %cst_64 = arith.constant 0.000000e+00 : f32
    %172 = vector.broadcast %cst_64 : f32 to vector<1x128xf32>
    %173 = arith.select %72, %171, %172 : vector<1x128xi1>, vector<1x128xf32>
    %174 = arith.maximumf %170, %173 : vector<1x128xf32>
    %c119_i32_65 = arith.constant 119 : i32
    %175 = tpu.dynamic_rotate %147 by %c119_i32_65 dim 1 : vector<1x128xf32>, i32 -> vector<1x128xf32>
    %cst_66 = arith.constant 0.000000e+00 : f32
    %176 = vector.broadcast %cst_66 : f32 to vector<1x128xf32>
    %177 = arith.select %78, %175, %176 : vector<1x128xi1>, vector<1x128xf32>
    %178 = arith.maximumf %174, %177 : vector<1x128xf32>
    %179 = arith.mulf %178, %35 : vector<1x128xf32>
    %180 = arith.addf %179, %37 : vector<1x128xf32>
    %c9_i32_67 = arith.constant 9 : i32
    %181 = tpu.dynamic_rotate %180 by %c9_i32_67 dim 1 : vector<1x128xf32>, i32 -> vector<1x128xf32>
    %cst_68 = arith.constant 0.000000e+00 : f32
    %182 = vector.broadcast %cst_68 : f32 to vector<1x128xf32>
    %183 = arith.select %48, %181, %182 : vector<1x128xi1>, vector<1x128xf32>
    %c8_i32_69 = arith.constant 8 : i32
    %184 = tpu.dynamic_rotate %180 by %c8_i32_69 dim 1 : vector<1x128xf32>, i32 -> vector<1x128xf32>
    %cst_70 = arith.constant 0.000000e+00 : f32
    %185 = vector.broadcast %cst_70 : f32 to vector<1x128xf32>
    %186 = arith.select %51, %184, %185 : vector<1x128xi1>, vector<1x128xf32>
    %187 = arith.maximumf %183, %186 : vector<1x128xf32>
    %c7_i32_71 = arith.constant 7 : i32
    %188 = tpu.dynamic_rotate %180 by %c7_i32_71 dim 1 : vector<1x128xf32>, i32 -> vector<1x128xf32>
    %cst_72 = arith.constant 0.000000e+00 : f32
    %189 = vector.broadcast %cst_72 : f32 to vector<1x128xf32>
    %190 = arith.select %57, %188, %189 : vector<1x128xi1>, vector<1x128xf32>
    %191 = arith.maximumf %187, %190 : vector<1x128xf32>
    %c1_i32_73 = arith.constant 1 : i32
    %192 = tpu.dynamic_rotate %180 by %c1_i32_73 dim 1 : vector<1x128xf32>, i32 -> vector<1x128xf32>
    %cst_74 = arith.constant 0.000000e+00 : f32
    %193 = vector.broadcast %cst_74 : f32 to vector<1x128xf32>
    %194 = arith.select %60, %192, %193 : vector<1x128xi1>, vector<1x128xf32>
    %195 = arith.maximumf %191, %194 : vector<1x128xf32>
    %c127_i32_75 = arith.constant 127 : i32
    %196 = tpu.dynamic_rotate %180 by %c127_i32_75 dim 1 : vector<1x128xf32>, i32 -> vector<1x128xf32>
    %cst_76 = arith.constant 0.000000e+00 : f32
    %197 = vector.broadcast %cst_76 : f32 to vector<1x128xf32>
    %198 = arith.select %63, %196, %197 : vector<1x128xi1>, vector<1x128xf32>
    %199 = arith.maximumf %195, %198 : vector<1x128xf32>
    %c121_i32_77 = arith.constant 121 : i32
    %200 = tpu.dynamic_rotate %180 by %c121_i32_77 dim 1 : vector<1x128xf32>, i32 -> vector<1x128xf32>
    %cst_78 = arith.constant 0.000000e+00 : f32
    %201 = vector.broadcast %cst_78 : f32 to vector<1x128xf32>
    %202 = arith.select %69, %200, %201 : vector<1x128xi1>, vector<1x128xf32>
    %203 = arith.maximumf %199, %202 : vector<1x128xf32>
    %c120_i32_79 = arith.constant 120 : i32
    %204 = tpu.dynamic_rotate %180 by %c120_i32_79 dim 1 : vector<1x128xf32>, i32 -> vector<1x128xf32>
    %cst_80 = arith.constant 0.000000e+00 : f32
    %205 = vector.broadcast %cst_80 : f32 to vector<1x128xf32>
    %206 = arith.select %72, %204, %205 : vector<1x128xi1>, vector<1x128xf32>
    %207 = arith.maximumf %203, %206 : vector<1x128xf32>
    %c119_i32_81 = arith.constant 119 : i32
    %208 = tpu.dynamic_rotate %180 by %c119_i32_81 dim 1 : vector<1x128xf32>, i32 -> vector<1x128xf32>
    %cst_82 = arith.constant 0.000000e+00 : f32
    %209 = vector.broadcast %cst_82 : f32 to vector<1x128xf32>
    %210 = arith.select %78, %208, %209 : vector<1x128xi1>, vector<1x128xf32>
    %211 = arith.maximumf %207, %210 : vector<1x128xf32>
    %212 = arith.mulf %211, %35 : vector<1x128xf32>
    %213 = arith.addf %212, %37 : vector<1x128xf32>
    %c9_i32_83 = arith.constant 9 : i32
    %214 = tpu.dynamic_rotate %213 by %c9_i32_83 dim 1 : vector<1x128xf32>, i32 -> vector<1x128xf32>
    %cst_84 = arith.constant 0.000000e+00 : f32
    %215 = vector.broadcast %cst_84 : f32 to vector<1x128xf32>
    %216 = arith.select %48, %214, %215 : vector<1x128xi1>, vector<1x128xf32>
    %c8_i32_85 = arith.constant 8 : i32
    %217 = tpu.dynamic_rotate %213 by %c8_i32_85 dim 1 : vector<1x128xf32>, i32 -> vector<1x128xf32>
    %cst_86 = arith.constant 0.000000e+00 : f32
    %218 = vector.broadcast %cst_86 : f32 to vector<1x128xf32>
    %219 = arith.select %51, %217, %218 : vector<1x128xi1>, vector<1x128xf32>
    %220 = arith.maximumf %216, %219 : vector<1x128xf32>
    %c7_i32_87 = arith.constant 7 : i32
    %221 = tpu.dynamic_rotate %213 by %c7_i32_87 dim 1 : vector<1x128xf32>, i32 -> vector<1x128xf32>
    %cst_88 = arith.constant 0.000000e+00 : f32
    %222 = vector.broadcast %cst_88 : f32 to vector<1x128xf32>
    %223 = arith.select %57, %221, %222 : vector<1x128xi1>, vector<1x128xf32>
    %224 = arith.maximumf %220, %223 : vector<1x128xf32>
    %c1_i32_89 = arith.constant 1 : i32
    %225 = tpu.dynamic_rotate %213 by %c1_i32_89 dim 1 : vector<1x128xf32>, i32 -> vector<1x128xf32>
    %cst_90 = arith.constant 0.000000e+00 : f32
    %226 = vector.broadcast %cst_90 : f32 to vector<1x128xf32>
    %227 = arith.select %60, %225, %226 : vector<1x128xi1>, vector<1x128xf32>
    %228 = arith.maximumf %224, %227 : vector<1x128xf32>
    %c127_i32_91 = arith.constant 127 : i32
    %229 = tpu.dynamic_rotate %213 by %c127_i32_91 dim 1 : vector<1x128xf32>, i32 -> vector<1x128xf32>
    %cst_92 = arith.constant 0.000000e+00 : f32
    %230 = vector.broadcast %cst_92 : f32 to vector<1x128xf32>
    %231 = arith.select %63, %229, %230 : vector<1x128xi1>, vector<1x128xf32>
    %232 = arith.maximumf %228, %231 : vector<1x128xf32>
    %c121_i32_93 = arith.constant 121 : i32
    %233 = tpu.dynamic_rotate %213 by %c121_i32_93 dim 1 : vector<1x128xf32>, i32 -> vector<1x128xf32>
    %cst_94 = arith.constant 0.000000e+00 : f32
    %234 = vector.broadcast %cst_94 : f32 to vector<1x128xf32>
    %235 = arith.select %69, %233, %234 : vector<1x128xi1>, vector<1x128xf32>
    %236 = arith.maximumf %232, %235 : vector<1x128xf32>
    %c120_i32_95 = arith.constant 120 : i32
    %237 = tpu.dynamic_rotate %213 by %c120_i32_95 dim 1 : vector<1x128xf32>, i32 -> vector<1x128xf32>
    %cst_96 = arith.constant 0.000000e+00 : f32
    %238 = vector.broadcast %cst_96 : f32 to vector<1x128xf32>
    %239 = arith.select %72, %237, %238 : vector<1x128xi1>, vector<1x128xf32>
    %240 = arith.maximumf %236, %239 : vector<1x128xf32>
    %c119_i32_97 = arith.constant 119 : i32
    %241 = tpu.dynamic_rotate %213 by %c119_i32_97 dim 1 : vector<1x128xf32>, i32 -> vector<1x128xf32>
    %cst_98 = arith.constant 0.000000e+00 : f32
    %242 = vector.broadcast %cst_98 : f32 to vector<1x128xf32>
    %243 = arith.select %78, %241, %242 : vector<1x128xi1>, vector<1x128xf32>
    %244 = arith.maximumf %240, %243 : vector<1x128xf32>
    %245 = vector.extract_strided_slice %244 {offsets = [0, 0], sizes = [1, 64], strides = [1, 1]} : vector<1x128xf32> to vector<1x64xf32>
    %c288 = arith.constant 288 : index
    %c0_99 = arith.constant 0 : index
    %246 = vector.load %arg1[%c288, %c0_99] : memref<464x192xbf16, #tpu.memory_space<vmem>>, vector<64x32xbf16>
    %247 = arith.truncf %245 : vector<1x64xf32> to vector<1x64xbf16>
    %cst_100 = arith.constant dense<0.000000e+00> : vector<1x32xf32>
    %248 = tpu.matmul %247, %246, %cst_100 {dimension_numbers = #tpu.dot_dimension_numbers<[1], [0], [0], [1], [0, 0, 1, 1], [], []>} : vector<1x64xbf16>, vector<64x32xbf16>, vector<1x32xf32> -> vector<1x32xf32>
    %249 = arith.addf %248, %10 : vector<1x32xf32>
    %c432 = arith.constant 432 : index
    %c0_101 = arith.constant 0 : index
    %250 = vector.load %arg1[%c432, %c0_101] : memref<464x192xbf16, #tpu.memory_space<vmem>>, vector<1x32xbf16>
    %251 = arith.extf %250 : vector<1x32xbf16> to vector<1x32xf32>
    %252 = arith.addf %249, %251 : vector<1x32xf32>
    %cst_102 = arith.constant 0.000000e+00 : f32
    %253 = vector.broadcast %cst_102 : f32 to vector<1x32xf32>
    %254 = arith.maximumf %252, %253 : vector<1x32xf32>
    %c352 = arith.constant 352 : index
    %c0_103 = arith.constant 0 : index
    %255 = vector.load %arg1[%c352, %c0_103] : memref<464x192xbf16, #tpu.memory_space<vmem>>, vector<32x8xbf16>
    %256 = arith.truncf %254 : vector<1x32xf32> to vector<1x32xbf16>
    %cst_104 = arith.constant dense<0.000000e+00> : vector<1x8xf32>
    %257 = tpu.matmul %256, %255, %cst_104 {dimension_numbers = #tpu.dot_dimension_numbers<[1], [0], [0], [1], [0, 0, 1, 1], [], []>} : vector<1x32xbf16>, vector<32x8xbf16>, vector<1x8xf32> -> vector<1x8xf32>
    %c448 = arith.constant 448 : index
    %c0_105 = arith.constant 0 : index
    %258 = vector.load %arg1[%c448, %c0_105] : memref<464x192xbf16, #tpu.memory_space<vmem>>, vector<1x8xbf16>
    %259 = arith.extf %258 : vector<1x8xbf16> to vector<1x8xf32>
    %260 = arith.addf %257, %259 : vector<1x8xf32>
    %cst_106 = arith.constant dense<0xFF800000> : vector<1xf32>
    %261 = vector.multi_reduction <maximumf>, %260, %cst_106 [1] : vector<1x8xf32> to vector<1xf32>
    %262 = vector.shape_cast %261 : vector<1xf32> to vector<1x1xf32>
    %263 = vector.broadcast %262 : vector<1x1xf32> to vector<1x8xf32>
    %264 = arith.subf %260, %263 : vector<1x8xf32>
    %265 = math.exp %264 : vector<1x8xf32>
    %cst_107 = arith.constant dense<0.000000e+00> : vector<1xf32>
    %266 = vector.multi_reduction <add>, %265, %cst_107 [1] : vector<1x8xf32> to vector<1xf32>
    %267 = vector.shape_cast %266 : vector<1xf32> to vector<1x1xf32>
    %268 = tpu.reciprocal %267 {approx = true} : vector<1x1xf32> -> vector<1x1xf32>
    %269 = vector.broadcast %268 : vector<1x1xf32> to vector<1x8xf32>
    %270 = arith.mulf %265, %269 : vector<1x8xf32>
    %271 = vector.extract_strided_slice %0 {offsets = [0, 64], sizes = [1, 64], strides = [1, 1]} : vector<1x192xf32> to vector<1x64xf32>
    %cst_108 = arith.constant 1.000000e+00 : f32
    %272 = vector.broadcast %cst_108 : f32 to vector<1x64xf32>
    %273 = arith.cmpf oeq, %271, %272 : vector<1x64xf32>
    %cst_109 = arith.constant 0.000000e+00 : f32
    %274 = vector.broadcast %cst_109 : f32 to vector<1x64xf32>
    %275 = arith.select %273, %245, %274 : vector<1x64xi1>, vector<1x64xf32>
    %cst_110 = arith.constant dense<0.000000e+00> : vector<1xf32>
    %276 = vector.multi_reduction <add>, %275, %cst_110 [1] : vector<1x64xf32> to vector<1xf32>
    %277 = vector.shape_cast %276 : vector<1xf32> to vector<1x1xf32>
    %278 = vector.shape_cast %277 : vector<1x1xf32> to vector<1x1xf32>
    %279 = vector.broadcast %278 : vector<1x1xf32> to vector<1x56xf32>
    %280 = tpu.concatenate %245, %270, %279 in 1 : vector<1x64xf32>, vector<1x8xf32>, vector<1x56xf32> -> vector<1x128xf32>
    %c0_111 = arith.constant 0 : index
    %c0_112 = arith.constant 0 : index
    %281 = vector.load %arg2[%c0_111, %c0_112] : memref<1x128xf32, #tpu.memory_space<vmem>>, vector<1x128xf32>
    tpu.vector_store %arg2[%c0_111, %c0_112], %280 {strides = array<i32>} : memref<1x128xf32, #tpu.memory_space<vmem>>, vector<1x128xf32>,
    return
  }
}

</mosaic_0001>

<bundles_post_ra>
// kernel: forward.1
= control target key start
LH: loop header
LB: loop body
LE: loop exit
PB: predicated region body
PF: predicated region fallthrough
CT: control target
= control target key end

     0   :  { %7 = vsyncpa [#allocation3], 0  ;;  %s903_s9 = smov [#allocation2]   ;;  %s1204_s0 = inlined_call_operand.vmem [shape: f32[1,192], index: 0, kind: input, shape index: {}]   ;;  %s1205_s1 = inlined_call_operand.hbm [shape: bf16[464,192], index: 1, kind: input, shape index: {}]   ;;  %s1206_s2 = inlined_call_operand.vmem [shape: f32[1,128], index: 2, kind: output, shape index: {}]  }
   0x1   :  { %s15_s10 = sshll.u32 %s903_s9, 4  ;;  %s16_s10 = int_to_ptr.vmem [resolvable:$true] %s15_s10 }
   0x2   :  { %s889_s11 = scalar_lea.vmem %s16_s10, 7424  ;;  %p894_p1 = scmp.lt.s32.totalorder %s16_s10, %s16_s10 }
   0x3   :  { %p890_p0 = scmp.ne.s32.totalorder %s16_s10, %s889_s11  ;;  %p895_p2 = scmp.lt.s32.totalorder %s889_s11, %s889_s11 }
   0x5   :  { %p896_p3 = por %p895_p2, %p894_p1 }
   0x7   :  { %p897_p4 = pnand %p896_p3, %p890_p0 }
   0x9   :  { %900 = shalt.err (!%p897_p4)
}
   0xa   :  { %s904_s12 = smov 128   ;;  %s905_s13 = smov 8  }
   0xb   :  { %21 = dma.hbm_to_vmem [thread:$0]  %s1205_s1, 7424, %s16_s10, [#allocation3], %s904_s12, %s904_s12, %s905_s13  }
   0xc   :  { %901 = dma.done.wait [#allocation3], 7424  }
   0xd   :  { %902 = vsyncadd [#allocation3], 4294959872  ;;  %v906_v0 = vmov 0   ;;  %v907_v1 = vmov 0.0   ;;  %v837_v2 = vld [vmem:[#allocation2 + $0x70] ss:$8 sps:$4 sm:$0xff]   ;;  %v52_v3 = vlaneseq }
   0xe   :  { %140 = vmatprep.subr.bf16.mxu0 %v906_v0  ;;  %793 = vmatprep.subr.bf16.mxu1 %v907_v1  ;;  %v838_v4 = vld [vmem:[#allocation2 + $0x60] ss:$8 sps:$4 sm:$0xff]   ;;  %v839_v6 = vld [vmem:[#allocation2 + $0x50] ss:$8 sps:$4 sm:$0xff]   ;;  %vm136_vm0 = vcmask 523264   ;;  %vm908_vm1 = vmmov 0  }
   0xf   :  { %141 = vmatpush1.bf16.msra.mxu0 %v837_v2  ;;  %v942_v5 = vshrl.u32 %v52_v3, 7  ;;  %v840_v8 = vld [vmem:[#allocation2 + $0x40] ss:$8 sps:$4 sm:$0xff]   ;;  %v841_v9 = vld [vmem:[#allocation2 + $0x30] ss:$8 sps:$4 sm:$0xff]   ;;  %797 = vmatprep.mubr.msk.bf16.mxu1 %vm908_vm1, %v907_v1  ;;  %vm203_vm2 = vcmask 261120  }
  0x10   :  { %142 = vmatprep.subr.bf16.mxu0 %v906_v0  ;;  %v950_v10 = vld [vmem:[%s1204_s0] sm:$0x3]  ;;  %v843_v14 = vld [vmem:[#allocation2 + $0x10] ss:$8 sps:$4 sm:$0xff]   ;;  %v853_v25 = vld [vmem:[#allocation2 + $0xf4] ss:$8 sps:$4 sm:$0xff]  }
  0x11   :  { %v58_v7 = vsub.s32 1, %v942_v5  ;;  %v842_v13 = vld [vmem:[#allocation2 + $0x20] ss:$8 sps:$4 sm:$0xff]   ;;  %v845_v16 = vld [vmem:[#allocation2 + $0xb0] ss:$8 sps:$4 sm:$0xff]   ;;  %v54_v18 = vsub.s32 0, %v942_v5 }
  0x12   :  { %v844_v15 = vld [vmem:[#allocation2] ss:$8 sps:$4 sm:$0xff]   ;;  %v847_v19 = vld [vmem:[#allocation2 + $0x90] ss:$8 sps:$4 sm:$0xff]   ;;  %v856_v35 = vld [vmem:[#allocation2 + $0xe4] ss:$8 sps:$4 sm:$0xff]  }
  0x13   :  { %143 = vmatpush1.bf16.msra.mxu0 %v838_v4  ;;  %v59_v11 = vrot.slane %v950_v10, %v58_v7  ;;  %v846_v17 = vld [vmem:[#allocation2 + $0xa0] ss:$8 sps:$4 sm:$0xff]   ;;  %v55_v20 = vrot.slane %v950_v10, %v54_v18  ;;  %v849_v23 = vld [vmem:[#allocation2 + $0x110] ss:$8 sps:$4 sm:$0xff]   ;;  %v859_v38 = vld [vmem:[#allocation2 + $0xd4] ss:$8 sps:$4 sm:$0xff]  }
  0x14   :  { %144 = vmatprep.subr.bf16.mxu0 %v906_v0  ;;  %v848_v21 = vld [vmem:[#allocation2 + $0x80] ss:$8 sps:$4 sm:$0xff]   ;;  %794 = vmatpush3.bf16.msra.mxu1 %v849_v23  ;;  %v851_v33 = vld [vmem:[#allocation2 + $0xf0] ss:$8 sps:$4 sm:$0xff]   ;;  %v862_v40 = vld [vmem:[#allocation2 + $0xc4] ss:$8 sps:$4 sm:$0xff]  }
  0x15   :  { %v63_v12 = vpack.c.bf16 %v59_v11, %v59_v11  ;;  %v62_v22 = vpack.c.bf16 %v55_v20, %v55_v20  ;;  %795 = vmatprep.subr.bf16.mxu1 %v907_v1  ;;  %v850_v24 = vld [vmem:[#allocation2 + $0x100] ss:$8 sps:$4 sm:$0xff]   ;;  %v857_v39 = vld [vmem:[#allocation2 + $0xd0] ss:$8 sps:$4 sm:$0xff]   ;;  %s909_s0 = smov 64   ;;  %s910_s17 = smov 7  }
  0x16   :  { %v180_v26 = vld [vmem:[#allocation2 + $0x180] sm:$0x1]  ;;  %v189_v42 = vld [vmem:[#allocation2 + $0x190] sm:$0x1]  ;;  %s911_s18 = smov 9   ;;  %s912_s19 = smov 127  }
  0x17   :  { %145 = vmatpush1.bf16.msra.mxu0 %v839_v6  ;;  %761 = vmatprep.mubr.msk.bf16.mxu0 %vm136_vm0, %v63_v12  ;;  %v181_v27 = vunpack.c.l.bf16 %v180_v26  ;;  %v854_v37 = vld [vmem:[#allocation2 + $0xe0] ss:$8 sps:$4 sm:$0xff]   ;;  %v190_v43 = vunpack.c.l.bf16 %v189_v42  ;;  %s913_s20 = smov 120   ;;  %s914_s21 = smov 1  }
  0x18   :  { %146 = vmatprep.subr.bf16.mxu0 %v906_v0  ;;  %796 = vmatpush3.bf16.msra.mxu1 %v850_v24  ;;  %v860_v41 = vld [vmem:[#allocation2 + $0xc0] ss:$8 sps:$4 sm:$0xff]   ;;  %s915_s22 = smov 121   ;;  %s916_s23 = smov 119  }
  0x19   :  { %311 = vmatprep.subr.bf16.mxu1 %v853_v25  ;;  %v257_v51 = vld [vmem:[#allocation2 + $0x1a0] sm:$0x11]  ;;  %s917_s24 = smov 96  }
  0x1a   :  { %v258_v52 = vunpack.c.l.bf16 %v257_v51  ;;  %v259_v2 = vunpack.c.h.bf16 %v257_v51 }
  0x1b   :  { %147 = vmatpush1.bf16.msra.mxu0 %v840_v8 }
  0x1c   :  { %148 = vmatprep.subr.bf16.mxu0 %v906_v0 }
  0x1f   :  { %149 = vmatpush1.bf16.msra.mxu0 %v841_v9 }
  0x20   :  { %150 = vmatprep.subr.bf16.mxu0 %v906_v0 }
  0x23   :  { %151 = vmatpush1.bf16.msra.mxu0 %v842_v13 }
  0x24   :  { %152 = vmatprep.subr.bf16.mxu0 %v906_v0 }
  0x27   :  { %153 = vmatpush1.bf16.msra.mxu0 %v843_v14 }
  0x28   :  { %154 = vmatprep.subr.bf16.mxu0 %v906_v0 }
  0x2b   :  { %155 = vmatpush1.bf16.msra.mxu0 %v844_v15 }
  0x2c   :  { %164 = vmatprep.subr.bf16.mxu0 %v906_v0 }
  0x2f   :  { %165 = vmatpush2.bf16.msra.mxu0 %v845_v16 }
  0x30   :  { %166 = vmatprep.subr.bf16.mxu0 %v906_v0 }
  0x33   :  { %167 = vmatpush2.bf16.msra.mxu0 %v846_v17  ;;  %v366_v17 = vand.u32 127, %v52_v3 }
  0x34   :  { %168 = vmatprep.subr.bf16.mxu0 %v906_v0 }
  0x35   :  { %vm368_vm3 = vcmp.lt.s32.totalorder %v366_v17, 64  ;;  %vm369_vm4 = vcmp.ge.s32.totalorder %v366_v17, 8  ;;  %vm377_vm10 = vcmp.lt.s32.totalorder %v366_v17, 56 }
  0x36   :  { %vm998_vm5 = vmand %vm368_vm3, %vm369_vm4  ;;  %vm741_vm4 = vcmask 588800  }
  0x37   :  { %169 = vmatpush2.bf16.msra.mxu0 %v847_v19  ;;  %v367_v19 = vand.u32 7, %v366_v17  ;;  %vm1047_vm13 = vmand %vm368_vm3, %vm377_vm10 }
  0x38   :  { %170 = vmatprep.subr.bf16.mxu0 %v906_v0 }
  0x39   :  { %vm1002_vm6 = vcmp.ge.s32.totalorder %v367_v19, 1  ;;  %vm1006_vm7 = vcmp.le.s32.totalorder %v367_v19, 6 }
  0x3a   :  { %vm1014_vm8 = vmand %vm998_vm5, %vm1002_vm6 }
  0x3b   :  { %171 = vmatpush2.bf16.msra.mxu0 %v848_v21  ;;  %vm1022_vm9 = vmand %vm998_vm5, %vm1006_vm7 }
  0x3c   :  { %vm1033_vm11 = vmand %vm368_vm3, %vm1002_vm6 }
  0x3d   :  { %vm1042_vm12 = vmand %vm368_vm3, %vm1006_vm7  ;;  %vm704_vm3 = vcmp.eq.f32.partialorder %v950_v10, 1.0 }
  0x3e   :  { %173 = vmatmul.mubr.bf16.vlgmr.msra.gmra.mxu0 %v62_v22  ;;  %vm1057_vm14 = vmand %vm1047_vm13, %vm1002_vm6 }
  0x3f   :  { %vm1069_vm15 = vmand %vm1047_vm13, %vm1006_vm7 }
  0xfe   :  { %v969_v28 = vpop.f32.mrf.mxu0 }
  0xff   :  { %v182_v29 = vadd.f32 %v181_v27, %v969_v28 }
 0x100   :  { %v176_v30 = vpop.f32.mrf.mxu0 }
 0x101   :  { %v183_v31 = vmax.f32 %v182_v29, 0.0 }
 0x102   :  { %v177_v32 = vpop.f32.mrf.mxu0 }
 0x103   :  { %v188_v34 = vpack.c.bf16 %v183_v31, %v183_v31 }
 0x104   :  { %v178_v36 = vpop.f32.mrf.mxu0 }
 0x105   :  { %798 = vmatmul.mubr.msk.bf16.vlgmr.msra.gmra.mxu1 %vm203_vm2, %v188_v34 }
 0x106   :  { %312 = vmatpush1.bf16.msra.mxu1 %v851_v33  ;;  %335 = vmatprep.mubr.bf16.mxu1 %v906_v0 }
 0x107   :  { %313 = vmatprep.subr.bf16.mxu1 %v856_v35 }
 0x10a   :  { %314 = vmatpush1.bf16.msra.mxu1 %v854_v37  ;;  %v868_v37 = vld [vmem:[#allocation2 + $0x160] ss:$8 sps:$4 sm:$0xff]  }
 0x10b   :  { %315 = vmatprep.subr.bf16.mxu1 %v859_v38 }
 0x10e   :  { %316 = vmatpush1.bf16.msra.mxu1 %v857_v39 }
 0x10f   :  { %317 = vmatprep.subr.bf16.mxu1 %v862_v40  ;;  %v867_v40 = vld [vmem:[#allocation2 + $0x170] ss:$8 sps:$4 sm:$0xff]  }
 0x112   :  { %318 = vmatpush1.bf16.msra.mxu1 %v860_v41 }
 0x113   :  { %801 = vmatprep.subr.bf16.mxu1 %v907_v1 }
 0x1c5   :  { %v241_v44 = vpop.f32.mrf.mxu1 }
 0x1c6   :  { %v242_v45 = vadd.f32 %v241_v44, %v190_v43 }
 0x1c7   :  { %v799_v46 = vpop.f32.mrf.mxu1 }
 0x1c8   :  { %v247_v47 = vmax.f32 %v242_v45, 0.0 }
 0x1c9   :  { %v244_v48 = vpop.f32.mrf.mxu1 }
 0x1ca   :  { %v256_v49 = vpack.c.bf16 %v247_v47, %v247_v47 }
 0x1cb   :  { %v800_v50 = vpop.f32.mrf.mxu1 }
 0x1cc   :  { %773 = vmatmul.mubr.msk.bf16.vlgmr.msra.gmra.mxu1 %vm136_vm0, %v256_v49 }
 0x1cd   :  { %809 = vmatprep.mubr.msk.bf16.mxu1 %vm908_vm1, %v907_v1 }
 0x28c   :  { %v337_v53 = vpop.f32.mrf.mxu1 }
 0x28d   :  { %v338_v54 = vadd.f32 %v337_v53, %v258_v52 }
 0x28e   :  { %v339_v55 = vpop.f32.mrf.mxu1 }
 0x28f   :  { %v344_v56 = vsub.f32 0.0, %v338_v54  ;;  %v340_v4 = vadd.f32 %v339_v55, %v259_v2 }
 0x290   :  { %v341_v57 = vpop.f32.mrf.mxu1 }
 0x291   :  { %v346_v58 = vmul.f32 1.442695, %v344_v56  ;;  %v345_v6 = vsub.f32 0.0, %v340_v4 }
 0x292   :  { %v342_v59 = vpop.f32.mrf.mxu1 }
 0x293   :  { %869 = vpow2.f32 %v346_v58  ;;  %v348_v7 = vmul.f32 1.442695, %v345_v6 }
 0x2a0   :  { %v870_v60 = vpop.eup %869 }
 0x2a1   :  { %v350_v61 = vadd.f32 1.0, %v870_v60 }
 0x2a3   :  { %871 = vrcp.f32 %v350_v61 }
 0x2a4   :  { %873 = vpow2.f32 %v348_v7 }
 0x2b0   :  { %v872_v62 = vpop.eup %871 }
 0x2b1   :  { %356 = vrot.lane.b32.xlu0 %v872_v62, %s909_s0  ;;  %v874_v8 = vpop.eup %873 }
 0x2b2   :  { %v351_v9 = vadd.f32 1.0, %v874_v8 }
 0x2b4   :  { %875 = vrcp.f32 %v351_v9 }
 0x2c1   :  { %v876_v11 = vpop.eup %875 }
 0x2c2   :  { %v981_v12 = vsel %vm136_vm0, %v876_v11, 0.0 }
 0x2c3   :  { %v381_v13 = vmul.f32 0.0, %v981_v12 }
 0x323   :  { %v357_v63 = vpop.permute.xlu0 %356 }
 0x324   :  { %v359_v0 = vsub.f32 %v872_v62, %v357_v63 }
 0x326   :  { %361 = vrot.lane.b32.xlu0 %v359_v0, %s909_s0 }
 0x398   :  { %v362_v14 = vpop.permute.xlu0 %361 }
 0x399   :  { %v985_v15 = vsel %vm136_vm0, %v362_v14, 0.0 }
 0x39a   :  { %v382_v16 = vadd.f32 %v381_v13, %v985_v15 }
 0x39c   :  { %390 = vrot.lane.b32.xlu0 %v382_v16, %s910_s17  ;;  %383 = vrot.lane.b32.xlu1 %v382_v16, %s911_s18 }
 0x3a0   :  { %398 = vrot.lane.b32.xlu0 %v382_v16, %s912_s19  ;;  %386 = vrot.lane.b32.xlu1 %v382_v16, %s905_s13 }
 0x3a4   :  { %406 = vrot.lane.b32.xlu0 %v382_v16, %s913_s20  ;;  %394 = vrot.lane.b32.xlu1 %v382_v16, %s914_s21 }
 0x3a8   :  { %402 = vrot.lane.b32.xlu1 %v382_v16, %s915_s22 }
 0x3ac   :  { %410 = vrot.lane.b32.xlu1 %v382_v16, %s916_s23 }
 0x40e   :  { %v391_v22 = vpop.permute.xlu0 %390  ;;  %v384_v23 = vpop.permute.xlu1 %383 }
 0x40f   :  { %v385_v27 = vsel %vm1014_vm8, %v384_v23, 0.0  ;;  %v392_v33 = vsel %vm1022_vm9, %v391_v22, 0.0 }
 0x412   :  { %v387_v26 = vpop.permute.xlu1 %386  ;;  %v399_v30 = vpop.permute.xlu0 %398 }
 0x413   :  { %v388_v29 = vsel %vm998_vm5, %v387_v26, 0.0  ;;  %v400_v41 = vsel %vm1042_vm12, %v399_v30, 0.0 }
 0x414   :  { %v389_v31 = vmax.f32 %v385_v27, %v388_v29 }
 0x416   :  { %v393_v35 = vmax.f32 %v389_v31, %v392_v33  ;;  %v395_v36 = vpop.permute.xlu1 %394  ;;  %v407_v42 = vpop.permute.xlu0 %406 }
 0x417   :  { %v396_v38 = vsel %vm1033_vm11, %v395_v36, 0.0  ;;  %v408_v48 = vsel %vm1047_vm13, %v407_v42, 0.0 }
 0x418   :  { %v397_v39 = vmax.f32 %v393_v35, %v396_v38 }
 0x41a   :  { %v401_v43 = vmax.f32 %v397_v39, %v400_v41  ;;  %v403_v44 = vpop.permute.xlu1 %402 }
 0x41b   :  { %v404_v45 = vsel %vm1057_vm14, %v403_v44, 0.0 }
 0x41c   :  { %v405_v46 = vmax.f32 %v401_v43, %v404_v45 }
 0x41e   :  { %v409_v49 = vmax.f32 %v405_v46, %v408_v48  ;;  %v411_v50 = vpop.permute.xlu1 %410 }
 0x41f   :  { %v412_v51 = vsel %vm1069_vm15, %v411_v50, 0.0 }
 0x420   :  { %v413_v52 = vmax.f32 %v409_v49, %v412_v51 }
 0x422   :  { %v414_v53 = vmul.f32 %v413_v52, %v981_v12 }
 0x424   :  { %v415_v54 = vadd.f32 %v414_v53, %v985_v15 }
 0x426   :  { %419 = vrot.lane.b32.xlu1 %v415_v54, %s905_s13  ;;  %416 = vrot.lane.b32.xlu0 %v415_v54, %s911_s18 }
 0x42a   :  { %427 = vrot.lane.b32.xlu1 %v415_v54, %s914_s21  ;;  %423 = vrot.lane.b32.xlu0 %v415_v54, %s910_s17 }
 0x42e   :  { %435 = vrot.lane.b32.xlu1 %v415_v54, %s915_s22  ;;  %431 = vrot.lane.b32.xlu0 %v415_v54, %s912_s19 }
 0x432   :  { %443 = vrot.lane.b32.xlu1 %v415_v54, %s916_s23  ;;  %439 = vrot.lane.b32.xlu0 %v415_v54, %s913_s20 }
 0x498   :  { %v420_v55 = vpop.permute.xlu1 %419  ;;  %v417_v56 = vpop.permute.xlu0 %416 }
 0x499   :  { %v421_v57 = vsel %vm998_vm5, %v420_v55, 0.0  ;;  %v418_v58 = vsel %vm1014_vm8, %v417_v56, 0.0 }
 0x49a   :  { %v422_v59 = vmax.f32 %v418_v58, %v421_v57 }
 0x49c   :  { %v428_v60 = vpop.permute.xlu1 %427  ;;  %v424_v61 = vpop.permute.xlu0 %423 }
 0x49d   :  { %v425_v62 = vsel %vm1022_vm9, %v424_v61, 0.0  ;;  %v429_v0 = vsel %vm1033_vm11, %v428_v60, 0.0 }
 0x49e   :  { %v426_v63 = vmax.f32 %v422_v59, %v425_v62 }
 0x4a0   :  { %v436_v2 = vpop.permute.xlu1 %435  ;;  %v430_v4 = vmax.f32 %v426_v63, %v429_v0  ;;  %v432_v6 = vpop.permute.xlu0 %431 }
 0x4a1   :  { %v433_v7 = vsel %vm1042_vm12, %v432_v6, 0.0  ;;  %v437_v9 = vsel %vm1057_vm14, %v436_v2, 0.0 }
 0x4a2   :  { %v434_v8 = vmax.f32 %v430_v4, %v433_v7 }
 0x4a4   :  { %v444_v11 = vpop.permute.xlu1 %443  ;;  %v438_v13 = vmax.f32 %v434_v8, %v437_v9  ;;  %v440_v14 = vpop.permute.xlu0 %439 }
 0x4a5   :  { %v441_v16 = vsel %vm1047_vm13, %v440_v14, 0.0  ;;  %v445_v19 = vsel %vm1069_vm15, %v444_v11, 0.0 }
 0x4a6   :  { %v442_v17 = vmax.f32 %v438_v13, %v441_v16  ;;  %v863_v13 = vld [vmem:[#allocation2 + $0x150] ss:$8 sps:$4 sm:$0xff]  }
 0x4a7   :  { %802 = vmatpush3.bf16.msra.mxu1 %v863_v13 }
 0x4a8   :  { %v446_v21 = vmax.f32 %v442_v17, %v445_v19  ;;  %803 = vmatprep.subr.bf16.mxu1 %v907_v1 }
 0x4aa   :  { %v447_v22 = vmul.f32 %v446_v21, %v981_v12 }
 0x4ac   :  { %v448_v23 = vadd.f32 %v447_v22, %v985_v15 }
 0x4ae   :  { %452 = vrot.lane.b32.xlu1 %v448_v23, %s905_s13  ;;  %449 = vrot.lane.b32.xlu0 %v448_v23, %s911_s18 }
 0x4b2   :  { %460 = vrot.lane.b32.xlu1 %v448_v23, %s914_s21  ;;  %456 = vrot.lane.b32.xlu0 %v448_v23, %s910_s17 }
 0x4b6   :  { %468 = vrot.lane.b32.xlu1 %v448_v23, %s915_s22  ;;  %464 = vrot.lane.b32.xlu0 %v448_v23, %s912_s19 }
 0x4ba   :  { %476 = vrot.lane.b32.xlu1 %v448_v23, %s916_s23  ;;  %472 = vrot.lane.b32.xlu0 %v448_v23, %s913_s20  ;;  %v864_v23 = vld [vmem:[#allocation2 + $0x140] ss:$8 sps:$4 sm:$0xff]  }
 0x4bb   :  { %804 = vmatpush3.bf16.msra.mxu1 %v864_v23 }
 0x4bc   :  { %805 = vmatprep.subr.bf16.mxu1 %v907_v1 }
 0x520   :  { %v453_v24 = vpop.permute.xlu1 %452  ;;  %v450_v26 = vpop.permute.xlu0 %449 }
 0x521   :  { %v454_v27 = vsel %vm998_vm5, %v453_v24, 0.0  ;;  %v451_v29 = vsel %vm1014_vm8, %v450_v26, 0.0 }
 0x522   :  { %v455_v30 = vmax.f32 %v451_v29, %v454_v27  ;;  %v865_v27 = vld [vmem:[#allocation2 + $0x130] ss:$8 sps:$4 sm:$0xff]  }
 0x523   :  { %806 = vmatpush3.bf16.msra.mxu1 %v865_v27 }
 0x524   :  { %v461_v31 = vpop.permute.xlu1 %460  ;;  %v457_v33 = vpop.permute.xlu0 %456  ;;  %807 = vmatprep.subr.bf16.mxu1 %v907_v1 }
 0x525   :  { %v458_v35 = vsel %vm1022_vm9, %v457_v33, 0.0  ;;  %v462_v38 = vsel %vm1033_vm11, %v461_v31, 0.0 }
 0x526   :  { %v459_v36 = vmax.f32 %v455_v30, %v458_v35  ;;  %v866_v30 = vld [vmem:[#allocation2 + $0x120] ss:$8 sps:$4 sm:$0xff]  }
 0x527   :  { %808 = vmatpush3.bf16.msra.mxu1 %v866_v30 }
 0x528   :  { %v469_v39 = vpop.permute.xlu1 %468  ;;  %v463_v41 = vmax.f32 %v459_v36, %v462_v38  ;;  %v465_v42 = vpop.permute.xlu0 %464  ;;  %813 = vmatprep.subr.bf16.mxu1 %v907_v1 }
 0x529   :  { %v466_v43 = vsel %vm1042_vm12, %v465_v42, 0.0  ;;  %v470_v45 = vsel %vm1057_vm14, %v469_v39, 0.0  ;;  %v918_v42 = vmov 1966171168  }
 0x52a   :  { %v467_v44 = vmax.f32 %v463_v41, %v466_v43  ;;  %v707_v43 = vunpack.c.l.s4 %v918_v42 }
 0x52c   :  { %v477_v46 = vpop.permute.xlu1 %476  ;;  %v471_v48 = vmax.f32 %v467_v44, %v470_v45  ;;  %v473_v49 = vpop.permute.xlu0 %472 }
 0x52d   :  { %v474_v50 = vsel %vm1047_vm13, %v473_v49, 0.0  ;;  %v478_v52 = vsel %vm1069_vm15, %v477_v46, 0.0 }
 0x52e   :  { %v475_v51 = vmax.f32 %v471_v48, %v474_v50  ;;  %v708_v48 = vunpack.c.0.s8 %v707_v43 }
 0x530   :  { %v479_v53 = vmax.f32 %v475_v51, %v478_v52  ;;  %v711_v32 = vsub.s32 %v708_v48, %v942_v5 }
 0x532   :  { %v480_v54 = vmul.f32 %v479_v53, %v981_v12 }
 0x534   :  { %v481_v55 = vadd.f32 %v480_v54, %v985_v15 }
 0x536   :  { %485 = vrot.lane.b32.xlu1 %v481_v55, %s905_s13  ;;  %482 = vrot.lane.b32.xlu0 %v481_v55, %s911_s18 }
 0x53a   :  { %493 = vrot.lane.b32.xlu1 %v481_v55, %s914_s21  ;;  %489 = vrot.lane.b32.xlu0 %v481_v55, %s910_s17 }
 0x53e   :  { %501 = vrot.lane.b32.xlu1 %v481_v55, %s915_s22  ;;  %497 = vrot.lane.b32.xlu0 %v481_v55, %s912_s19 }
 0x542   :  { %509 = vrot.lane.b32.xlu1 %v481_v55, %s916_s23  ;;  %505 = vrot.lane.b32.xlu0 %v481_v55, %s913_s20 }
 0x5a8   :  { %v486_v56 = vpop.permute.xlu1 %485  ;;  %v483_v57 = vpop.permute.xlu0 %482 }
 0x5a9   :  { %v487_v58 = vsel %vm998_vm5, %v486_v56, 0.0  ;;  %v484_v59 = vsel %vm1014_vm8, %v483_v57, 0.0 }
 0x5aa   :  { %v488_v60 = vmax.f32 %v484_v59, %v487_v58  ;;  %v626_v58 = vld [vmem:[#allocation2 + $0x1b0] sm:$0x1] }
 0x5ab   :  { %v627_v47 = vunpack.c.l.bf16 %v626_v58 }
 0x5ac   :  { %v494_v61 = vpop.permute.xlu1 %493  ;;  %v490_v62 = vpop.permute.xlu0 %489 }
 0x5ad   :  { %v491_v63 = vsel %vm1022_vm9, %v490_v62, 0.0  ;;  %v495_v2 = vsel %vm1033_vm11, %v494_v61, 0.0 }
 0x5ae   :  { %v492_v0 = vmax.f32 %v488_v60, %v491_v63 }
 0x5b0   :  { %v502_v4 = vpop.permute.xlu1 %501  ;;  %v496_v6 = vmax.f32 %v492_v0, %v495_v2  ;;  %v498_v7 = vpop.permute.xlu0 %497 }
 0x5b1   :  { %v499_v8 = vsel %vm1042_vm12, %v498_v7, 0.0  ;;  %v503_v11 = vsel %vm1057_vm14, %v502_v4, 0.0  ;;  %v635_v7 = vld [vmem:[#allocation2 + $0x1c0] sm:$0x1] }
 0x5b2   :  { %v500_v9 = vmax.f32 %v496_v6, %v499_v8  ;;  %v636_v8 = vunpack.c.l.bf16 %v635_v7 }
 0x5b4   :  { %v510_v14 = vpop.permute.xlu1 %509  ;;  %v504_v16 = vmax.f32 %v500_v9, %v503_v11  ;;  %v506_v17 = vpop.permute.xlu0 %505 }
 0x5b5   :  { %v507_v19 = vsel %vm1047_vm13, %v506_v17, 0.0  ;;  %v511_v22 = vsel %vm1069_vm15, %v510_v14, 0.0 }
 0x5b6   :  { %v508_v21 = vmax.f32 %v504_v16, %v507_v19 }
 0x5b8   :  { %v512_v24 = vmax.f32 %v508_v21, %v511_v22 }
 0x5ba   :  { %v513_v26 = vmul.f32 %v512_v24, %v981_v12 }
 0x5bc   :  { %v514_v29 = vadd.f32 %v513_v26, %v985_v15 }
 0x5be   :  { %518 = vrot.lane.b32.xlu1 %v514_v29, %s905_s13  ;;  %515 = vrot.lane.b32.xlu0 %v514_v29, %s911_s18 }
 0x5c2   :  { %526 = vrot.lane.b32.xlu1 %v514_v29, %s914_s21  ;;  %522 = vrot.lane.b32.xlu0 %v514_v29, %s910_s17 }
 0x5c6   :  { %534 = vrot.lane.b32.xlu1 %v514_v29, %s915_s22  ;;  %530 = vrot.lane.b32.xlu0 %v514_v29, %s912_s19 }
 0x5ca   :  { %542 = vrot.lane.b32.xlu1 %v514_v29, %s916_s23  ;;  %538 = vrot.lane.b32.xlu0 %v514_v29, %s913_s20 }
 0x5ce   :  { %580 = vrot.lane.b32.xlu0 %v969_v28, %s917_s24 }
 0x630   :  { %v519_v12 = vpop.permute.xlu1 %518  ;;  %v516_v15 = vpop.permute.xlu0 %515 }
 0x631   :  { %v520_v31 = vsel %vm998_vm5, %v519_v12, 0.0  ;;  %v517_v33 = vsel %vm1014_vm8, %v516_v15, 0.0 }
 0x632   :  { %v521_v35 = vmax.f32 %v517_v33, %v520_v31 }
 0x634   :  { %v527_v36 = vpop.permute.xlu1 %526  ;;  %v523_v38 = vpop.permute.xlu0 %522 }
 0x635   :  { %v524_v39 = vsel %vm1022_vm9, %v523_v38, 0.0  ;;  %v528_v28 = vsel %vm1033_vm11, %v527_v36, 0.0 }
 0x636   :  { %v525_v41 = vmax.f32 %v521_v35, %v524_v39 }
 0x638   :  { %v535_v44 = vpop.permute.xlu1 %534  ;;  %v529_v45 = vmax.f32 %v525_v41, %v528_v28  ;;  %v531_v46 = vpop.permute.xlu0 %530 }
 0x639   :  { %v532_v20 = vsel %vm1042_vm12, %v531_v46, 0.0  ;;  %v536_v49 = vsel %vm1057_vm14, %v535_v44, 0.0 }
 0x63a   :  { %v533_v3 = vmax.f32 %v529_v45, %v532_v20 }
 0x63c   :  { %v543_v50 = vpop.permute.xlu1 %542  ;;  %v537_v25 = vmax.f32 %v533_v3, %v536_v49  ;;  %v539_v51 = vpop.permute.xlu0 %538 }
 0x63d   :  { %v540_v52 = vsel %vm1047_vm13, %v539_v51, 0.0  ;;  %v544_v54 = vsel %vm1069_vm15, %v543_v50, 0.0 }
 0x63e   :  { %v541_v53 = vmax.f32 %v537_v25, %v540_v52 }
 0x640   :  { %v545_v55 = vmax.f32 %v541_v53, %v544_v54  ;;  %v581_v59 = vpop.permute.xlu0 %580 }
 0x642   :  { %v554_v34 = vpack.c.bf16 %v545_v55, %v545_v55  ;;  %v712_v56 = vrot.slane %v545_v55, %v711_v32 }
 0x644   :  { %810 = vmatmul.mubr.msk.bf16.vlgmr.msra.gmra.mxu1 %vm136_vm0, %v554_v34  ;;  %v719_v57 = vrot.slane %v712_v56, %v711_v32 }
 0x645   :  { %817 = vmatprep.mubr.msk.bf16.mxu1 %vm908_vm1, %v907_v1  ;;  %814 = vmatpush3.bf16.msra.mxu1 %v867_v40  ;;  %vm692_vm1 = vcmask 57344  }
 0x646   :  { %720 = vrot.lane.b32.xlu0 %v719_v57, %s909_s0  ;;  %815 = vmatprep.subr.bf16.mxu1 %v907_v1 }
 0x649   :  { %816 = vmatpush3.bf16.msra.mxu1 %v868_v37 }
 0x6b8   :  { %v721_v17 = vpop.permute.xlu0 %720 }
 0x6b9   :  { %v723_v19 = vsel %vm704_vm3, %v721_v17, 0.0 }
 0x6ba   :  { %v728_v21 = vrot.slane %v723_v19, %v54_v18 }
 0x704   :  { %v620_v60 = vpop.f32.mrf.mxu1 }
 0x705   :  { %v621_v61 = vadd.f32 %v620_v60, %v581_v59 }
 0x706   :  { %v811_v62 = vpop.f32.mrf.mxu1 }
 0x707   :  { %v628_v63 = vadd.f32 %v627_v47, %v621_v61 }
 0x708   :  { %v623_v0 = vpop.f32.mrf.mxu1 }
 0x709   :  { %v629_v2 = vmax.f32 %v628_v63, 0.0 }
 0x70a   :  { %v812_v4 = vpop.f32.mrf.mxu1 }
 0x70b   :  { %v634_v6 = vpack.c.bf16 %v629_v2, %v629_v2 }
 0x70d   :  { %818 = vmatmul.mubr.msk.bf16.vlgmr.msra.gmra.mxu1 %vm203_vm2, %v634_v6  ;;  %vm732_vm2 = vcmask 516096  }
 0x7cd   :  { %v686_v9 = vpop.f32.mrf.mxu1 }
 0x7ce   :  { %v687_v1 = vadd.f32 %v686_v9, %v636_v8 }
 0x7cf   :  { %v819_v11 = vpop.f32.mrf.mxu1 }
 0x7d0   :  { %v693_v13 = vsel %vm692_vm1, %v687_v1, -inf }
 0x7d1   :  { %694 = vmax.xlane.f32.xlu1 %v693_v13  ;;  %v689_v14 = vpop.f32.mrf.mxu1 }
 0x7d3   :  { %v820_v16 = vpop.f32.mrf.mxu1 }
 0x7e2   :  { %729 = vrot.lane.b32.xlu1 %v728_v21, %s909_s0 }
 0x85a   :  { %v695_v22 = vpop.xlane.xlu1 %694 }
 0x85b   :  { %v696_v23 = vsub.f32 %v687_v1, %v695_v22 }
 0x85d   :  { %v697_v24 = vmul.f32 1.442695, %v696_v23 }
 0x85e   :  { %v730_v29 = vpop.permute.xlu1 %729 }
 0x85f   :  { %877 = vpow2.f32 %v697_v24  ;;  %v733_v30 = vsel %vm732_vm2, %v730_v29, 0.0 }
 0x86c   :  { %v878_v26 = vpop.eup %877 }
 0x86d   :  { %v699_v27 = vsel %vm692_vm1, %v878_v26, 0.0 }
 0x86e   :  { %700 = vadd.xlane.f32.xlu0 %v699_v27 }
 0x872   :  { %734 = vadd.xlane.f32.xlu0 %v733_v30 }
 0x8f7   :  { %v701_v10 = vpop.xlane.xlu0 %700 }
 0x8f8   :  { %879 = vrcp.f32 %v701_v10 }
 0x8fb   :  { %v735_v5 = vpop.xlane.xlu0 %734 }
 0x905   :  { %v880_v12 = vpop.eup %879 }
 0x906   :  { %v703_v15 = vmul.f32 %v880_v12, %v878_v26 }
 0x908   :  { %737 = vrot.lane.b32.xlu0 %v703_v15, %s909_s0 }
 0x97a   :  { %v738_v18 = vpop.permute.xlu0 %737 }
 0x97b   :  { %v740_v31 = vsel %vm136_vm0, %v545_v55, %v738_v18 }
 0x97c   :  { %v742_v33 = vsel %vm741_vm4, %v740_v31, %v735_v5 }
 0x97d   :  { %743 = vst [vmem:[%s1206_s2] sm:$0x1] %v742_v33 }
 0x97e   :  { %748 = vsyncpa [#allocation3], 1 }

</bundles_post_ra>
